<compile_context>
chip_gen: v6e
topology: v6e:2x2x1
jax: 0.10.0
libtpu: 0.0.40
codegen_flags: <defaults>
</compile_context>

<pallas_src>
import functools

import jax
import jax.numpy as jnp
from jax import lax
from jax.experimental import pallas as pl
from jax.experimental.pallas import tpu as pltpu

LANES = 128
ACC_ROWS = 32          # (32, 128) f32 partial-sum block = 4 vregs (16 KiB)
MAX_TILE_ROWS = 4096   # 4096*128*4 B = 2 MiB per f32 input tile (8 MiB dbl-buffered x2 inputs)


def _bce_kernel(logits_ref, targets_ref, out_ref, *,
                tile_rows, steps, n_rows, needs_mask):
    p = pl.program_id(0)
    s = pl.program_id(1)

    @pl.when(s == 0)
    def _():
        out_ref[...] = jnp.zeros_like(out_ref)

    # Cast BEFORE the math: the sentinel pad (logit=-200, target=0) relies on
    # softplus underflowing to exactly 0 in f32.
    x = logits_ref[...].astype(jnp.float32)
    t = targets_ref[...].astype(jnp.float32)

    # Stable softplus: softplus(x) = max(x, 0) + log1p(exp(-|x|))
    # -> exactly 2 transcendentals (1 EUP exp + 1 log1p) per element.
    sp = jnp.maximum(x, 0.0) + jnp.log1p(jnp.exp(-jnp.abs(x)))
    # torch.nn.BCELoss clamps each log term at -100  =>  min(softplus(.), 100).
    # loss = t*min(sp-x,100) + (1-t)*min(sp,100), rearranged to save a multiply.
    a = jnp.minimum(sp - x, 100.0)
    b = jnp.minimum(sp, 100.0)
    loss = b + t * (a - b)

    if needs_mask:
        # Rows at/after n_rows are out-of-bounds garbage (ragged last block or a
        # clamped duplicate block) -> zero their contribution. Uses the
        # UNclamped block id so duplicate blocks are fully masked.
        blk = p * steps + s
        row = blk * tile_rows + lax.broadcasted_iota(
            jnp.int32, (tile_rows, LANES), 0)
        loss = jnp.where(row < n_rows, loss, 0.0)

    # Fold the tile into a tiny resident partial-sum block: pure VPU adds
    # across vregs (reduction over the major axis), no XLU, no big accumulator.
    out_ref[...] += loss.reshape(-1, ACC_ROWS, LANES).sum(axis=0, keepdims=True)


def bce_loss_2d(logits, targets):
    """Equivalent of BCELoss2d().forward(logits, targets) with default args."""
    assert logits.shape == targets.shape
    n_valid = logits.size

    flat_logits = logits.reshape(-1)
    flat_targets = targets.reshape(-1)

    rows = pl.cdiv(n_valid, LANES)

    # Tile rows: multiple of ACC_ROWS (also satisfies bf16/int8 sublane packing),
    # never larger than the (padded) array.
    tile_rows = min(MAX_TILE_ROWS, max(ACC_ROWS, (rows // ACC_ROWS) * ACC_ROWS))
    rows_padded = max(rows, tile_rows)

    n_padded = rows_padded * LANES
    n_pad = n_padded - n_valid
    if n_pad:
        # Sentinel pad: logit=-200 with target=0 contributes exactly 0 loss
        # (softplus(-200) underflows to 0 after the f32 cast). This copy only
        # happens when the element count is not a multiple of 128 or the input
        # is tiny; aligned inputs stream with no extra HBM traffic.
        flat_logits = jnp.pad(flat_logits, (0, n_pad), constant_values=-200.0)
        flat_targets = jnp.pad(flat_targets, (0, n_pad), constant_values=0.0)

    logits2d = flat_logits.reshape(rows_padded, LANES)
    targets2d = flat_targets.reshape(rows_padded, LANES)

    num_blocks = pl.cdiv(rows_padded, tile_rows)
    num_parallel = min(2, num_blocks)   # v7x has 2 TensorCores; no-op on v5e/v6e
    steps = pl.cdiv(num_blocks, num_parallel)
    needs_mask = (num_parallel * steps * tile_rows) != rows_padded

    def in_index_map(p_, s_):
        # Clamp so fully-out-of-range (duplicate) blocks re-read the last real
        # block; the in-kernel row mask zeroes their contribution.
        return (jnp.minimum(p_ * steps + s_, num_blocks - 1), 0)

    tile_spec = pl.BlockSpec((tile_rows, LANES), in_index_map)

    total_elems = num_parallel * steps * tile_rows * LANES
    cost = pl.CostEstimate(
        flops=12 * total_elems,
        transcendentals=2 * total_elems,
        bytes_accessed=int(logits2d.size * logits2d.dtype.itemsize
                           + targets2d.size * targets2d.dtype.itemsize
                           + num_parallel * ACC_ROWS * LANES * 4),
    )

    partials = pl.pallas_call(
        functools.partial(
            _bce_kernel,
            tile_rows=tile_rows,
            steps=steps,
            n_rows=rows_padded,
            needs_mask=needs_mask,
        ),
        out_shape=jax.ShapeDtypeStruct((num_parallel, ACC_ROWS, LANES), jnp.float32),
        grid_spec=pltpu.PrefetchScalarGridSpec(
            num_scalar_prefetch=0,
            grid=(num_parallel, steps),
            in_specs=[tile_spec, tile_spec],
            out_specs=pl.BlockSpec((1, ACC_ROWS, LANES), lambda p_, s_: (p_, 0, 0)),
        ),
        compiler_params=pltpu.CompilerParams(
            dimension_semantics=("parallel", "arbitrary"),
            vmem_limit_bytes=48 * 1024 * 1024,
        ),
        cost_estimate=cost,
    )(logits2d, targets2d)

    # size_average=True -> mean over the valid (unpadded) element count; the
    # final tiny reduce over (num_parallel, 32, 128) partials runs outside.
    return jnp.sum(partials) / jnp.float32(n_valid)


def bce_loss_2d_ref(logits, targets):
    # Reference matching torch: sigmoid -> BCELoss with log terms clamped at -100.
    p = jax.nn.sigmoid(logits.astype(jnp.float32)).reshape(-1)
    t = targets.astype(jnp.float32).reshape(-1)
    log_p = jnp.maximum(jnp.log(p), -100.0)
    log_1mp = jnp.maximum(jnp.log(1.0 - p), -100.0)
    return jnp.mean(-(t * log_p + (1.0 - t) * log_1mp))


def _check(key, shape, dtype=jnp.float32, atol=1e-5, rtol=1e-4):
    k1, k2 = jax.random.split(key)
    logits = jax.random.normal(k1, shape, dtype=jnp.float32).astype(dtype)
    targets = (jax.random.uniform(k2, shape) > 0.5).astype(jnp.float32)
    loss = bce_loss_2d(logits, targets)
    jax.block_until_ready(loss)
    ref = bce_loss_2d_ref(logits, targets)
    assert jnp.allclose(loss, ref, atol=atol, rtol=rtol), (shape, dtype, loss, ref)
    return loss


if __name__ == "__main__":
    key = jax.random.PRNGKey(0)
    keys = jax.random.split(key, 5)

    # Main case implied by the module's forward: NCHW logits + binary targets.
    _check(keys[0], (2, 4, 16, 16))

    # Extra coverage of the streaming paths:
    _check(keys[1], (2, 3, 7, 9))            # tiny, non-128-aligned -> sentinel pad
    _check(keys[2], (1, 2, 77, 128))         # ragged last block -> in-kernel row mask
    _check(keys[3], (4, 5, 256, 256))        # multi-step + 2-way parallel + duplicate-block mask
    _check(keys[4], (2, 4, 16, 16), dtype=jnp.bfloat16)  # bf16 logits stream

    print("KERNEL_OK")
</pallas_src>

<mosaic_0001>
module attributes {stable_mosaic.version = 11 : i64} {
  func.func @_bce_kernel(%arg0: i32, %arg1: i32, %arg2: memref<32x128xf32, #tpu.memory_space<vmem>>, %arg3: memref<32x128xf32, #tpu.memory_space<vmem>>, %arg4: memref<1x32x128xf32, #tpu.memory_space<vmem>>) attributes {dimension_semantics = [#tpu.dimension_semantics<parallel>, #tpu.dimension_semantics<arbitrary>], iteration_bounds = array<i64: 1, 1>, scalar_prefetch = 0 : i64, scratch_operands = 0 : i64, tpu.core_type = #tpu.core_type<tc>, window_params = [{transform_indices = @transform_0, window_bounds = array<i64: 32, 128>}, {transform_indices = @transform_1, window_bounds = array<i64: 32, 128>}, {transform_indices = @transform_2, window_bounds = array<i64: 1, 32, 128>}]} {
    %c0_i32 = arith.constant 0 : i32
    %0 = arith.cmpi eq, %arg1, %c0_i32 : i32
    %1 = arith.extui %0 : i1 to i32
    %c0_i32_0 = arith.constant 0 : i32
    %2 = arith.cmpi ne, %1, %c0_i32_0 : i32
    scf.if %2 {
      %cst_14 = arith.constant 0.000000e+00 : f32
      %27 = vector.broadcast %cst_14 : f32 to vector<1x32x128xf32>
      %c0_15 = arith.constant 0 : index
      %c0_16 = arith.constant 0 : index
      %c0_17 = arith.constant 0 : index
      %28 = vector.load %arg4[%c0_15, %c0_16, %c0_17] : memref<1x32x128xf32, #tpu.memory_space<vmem>>, vector<1x32x128xf32>
      tpu.vector_store %arg4[%c0_15, %c0_16, %c0_17], %27 {strides = array<i32>} : memref<1x32x128xf32, #tpu.memory_space<vmem>>, vector<1x32x128xf32>,
    } else {
    }
    %c0 = arith.constant 0 : index
    %c0_1 = arith.constant 0 : index
    %3 = vector.load %arg2[%c0, %c0_1] : memref<32x128xf32, #tpu.memory_space<vmem>>, vector<32x128xf32>
    %c0_2 = arith.constant 0 : index
    %c0_3 = arith.constant 0 : index
    %4 = vector.load %arg3[%c0_2, %c0_3] : memref<32x128xf32, #tpu.memory_space<vmem>>, vector<32x128xf32>
    %cst = arith.constant 0.000000e+00 : f32
    %5 = vector.broadcast %cst : f32 to vector<32x128xf32>
    %6 = arith.maximumf %3, %5 : vector<32x128xf32>
    %7 = math.absf %3 : vector<32x128xf32>
    %cst_4 = arith.constant 0.000000e+00 : f32
    %8 = vector.broadcast %cst_4 : f32 to vector<32x128xf32>
    %9 = arith.subf %8, %7 : vector<32x128xf32>
    %10 = math.exp %9 : vector<32x128xf32>
    %11 = math.log1p %10 : vector<32x128xf32>
    %12 = arith.addf %6, %11 : vector<32x128xf32>
    %13 = arith.subf %12, %3 : vector<32x128xf32>
    %cst_5 = arith.constant 1.000000e+02 : f32
    %14 = vector.broadcast %cst_5 : f32 to vector<32x128xf32>
    %15 = arith.minimumf %13, %14 : vector<32x128xf32>
    %cst_6 = arith.constant 1.000000e+02 : f32
    %16 = vector.broadcast %cst_6 : f32 to vector<32x128xf32>
    %17 = arith.minimumf %12, %16 : vector<32x128xf32>
    %18 = arith.subf %15, %17 : vector<32x128xf32>
    %19 = arith.mulf %4, %18 : vector<32x128xf32>
    %20 = arith.addf %17, %19 : vector<32x128xf32>
    %c0_7 = arith.constant 0 : index
    %c0_8 = arith.constant 0 : index
    %c0_9 = arith.constant 0 : index
    %21 = vector.load %arg4[%c0_7, %c0_8, %c0_9] : memref<1x32x128xf32, #tpu.memory_space<vmem>>, vector<1x32x128xf32>
    %22 = vector.shape_cast %20 : vector<32x128xf32> to vector<1x32x128xf32>
    %cst_10 = arith.constant dense<0.000000e+00> : vector<32x128xf32>
    %23 = vector.multi_reduction <add>, %22, %cst_10 [0] : vector<1x32x128xf32> to vector<32x128xf32>
    %24 = vector.shape_cast %23 : vector<32x128xf32> to vector<1x32x128xf32>
    %25 = arith.addf %21, %24 : vector<1x32x128xf32>
    %c0_11 = arith.constant 0 : index
    %c0_12 = arith.constant 0 : index
    %c0_13 = arith.constant 0 : index
    %26 = vector.load %arg4[%c0_11, %c0_12, %c0_13] : memref<1x32x128xf32, #tpu.memory_space<vmem>>, vector<1x32x128xf32>
    tpu.vector_store %arg4[%c0_11, %c0_12, %c0_13], %25 {strides = array<i32>} : memref<1x32x128xf32, #tpu.memory_space<vmem>>, vector<1x32x128xf32>,
    return
  }
  func.func @transform_0(%arg0: i32, %arg1: i32) -> (i32, i32) {
    %c1_i32 = arith.constant 1 : i32
    %0 = arith.muli %arg0, %c1_i32 : i32
    %1 = arith.addi %0, %arg1 : i32
    %c0_i32 = arith.constant 0 : i32
    %2 = arith.minsi %1, %c0_i32 : i32
    %c0_i32_0 = arith.constant 0 : i32
    %c0_i32_1 = arith.constant 0 : i32
    return %2, %c0_i32_0 : i32, i32
  }
  func.func @transform_1(%arg0: i32, %arg1: i32) -> (i32, i32) {
    %c1_i32 = arith.constant 1 : i32
    %0 = arith.muli %arg0, %c1_i32 : i32
    %1 = arith.addi %0, %arg1 : i32
    %c0_i32 = arith.constant 0 : i32
    %2 = arith.minsi %1, %c0_i32 : i32
    %c0_i32_0 = arith.constant 0 : i32
    %c0_i32_1 = arith.constant 0 : i32
    return %2, %c0_i32_0 : i32, i32
  }
  func.func @transform_2(%arg0: i32, %arg1: i32) -> (i32, i32, i32) {
    %c0_i32 = arith.constant 0 : i32
    %c0_i32_0 = arith.constant 0 : i32
    %c0_i32_1 = arith.constant 0 : i32
    return %arg0, %c0_i32, %c0_i32_0 : i32, i32, i32
  }
}

</mosaic_0001>

<bundles_post_ra>
// kernel: tpu_custom_call.1
= control target key start
LH: loop header
LB: loop body
LE: loop exit
PB: predicated region body
PF: predicated region fallthrough
CT: control target
= control target key end

     0   :  { %7 = vsyncpa [#allocation3], 0  ;;  %s350_s0 = inlined_call_operand.hbm [shape: f32[32,128], index: 0, kind: input, shape index: {}]   ;;  %s351_s1 = inlined_call_operand.hbm [shape: f32[32,128], index: 1, kind: input, shape index: {}]   ;;  %s352_s2 = inlined_call_operand.hbm [shape: f32[1,32,128], index: 2, kind: output, shape index: {}]  }
   0x1   :  { %8 = vsyncpa [#allocation6], 0 }
   0x2   :  { %9 = vsyncpa [#allocation4], 0  ;;  %s286_s9 = smov [#allocation2]  }
   0x3   :  { %s21_s10 = sshll.u32 %s286_s9, 4  ;;  %s22_s10 = int_to_ptr.vmem [resolvable:$true] %s21_s10 }
   0x4   :  { %s228_s11 = scalar_lea.vmem %s22_s10, 512  ;;  %p233_p1 = scmp.lt.s32.totalorder %s22_s10, %s22_s10 }
   0x5   :  { %p229_p0 = scmp.ne.s32.totalorder %s22_s10, %s228_s11  ;;  %p234_p2 = scmp.lt.s32.totalorder %s228_s11, %s228_s11 }
   0x7   :  { %p235_p3 = por %p234_p2, %p233_p1 }
   0x9   :  { %p236_p4 = pnand %p235_p3, %p229_p0 }
   0xb   :  { %239 = shalt.err (!%p236_p4)
}
   0xc   :  { %s287_s12 = smov 128   ;;  %s288_s13 = smov 8  }
   0xd   :  { %27 = dma.hbm_to_vmem [thread:$0]  %s350_s0, 512, %s22_s10, [#allocation3], %s287_s12, %s287_s12, %s288_s13  }
   0xe   :  { %s289_s16 = smov [#allocation5]  }
   0xf   :  { %s39_s17 = sshll.u32 %s289_s16, 4  ;;  %s40_s17 = int_to_ptr.vmem [resolvable:$true] %s39_s17 }
  0x10   :  { %s248_s18 = scalar_lea.vmem %s40_s17, 512  ;;  %p253_p6 = scmp.lt.s32.totalorder %s40_s17, %s40_s17 }
  0x11   :  { %p249_p5 = scmp.ne.s32.totalorder %s40_s17, %s248_s18  ;;  %p254_p7 = scmp.lt.s32.totalorder %s248_s18, %s248_s18 }
  0x13   :  { %p255_p8 = por %p254_p7, %p253_p6 }
  0x15   :  { %p256_p9 = pnand %p255_p8, %p249_p5 }
  0x17   :  { %259 = shalt.err (!%p256_p9)
}
  0x18   :  { %45 = dma.hbm_to_vmem [thread:$0]  %s351_s1, 512, %s40_s17, [#allocation6], %s287_s12, %s287_s12, %s288_s13  }
  0x19   :  { %280 = dma.done.wait [#allocation3], 512  }
  0x1a   :  { %281 = vsyncadd [#allocation3], 4294966784 }
  0x1b   :  { %282 = dma.done.wait [#allocation6], 512  }
  0x1c   :  { %283 = vsyncadd [#allocation6], 4294966784  ;;  %v318_v0 = vld [vmem:[#allocation2] sm:$0xff]  ;;  %v320_v1 = vld [vmem:[#allocation2 + $0x8] sm:$0xff]  ;;  %s290_s0 = smov [#allocation7]  }
  0x1d   :  { %v80_v2 = vand.u32 2147483647, %v318_v0  ;;  %v323_v3 = vld [vmem:[#allocation2 + $0x10] sm:$0xff]  ;;  %v81_v4 = vand.u32 2147483647, %v320_v1  ;;  %v327_v7 = vld [vmem:[#allocation2 + $0x18] sm:$0xff] }
  0x1e   :  { %v82_v5 = vand.u32 2147483647, %v323_v3  ;;  %v83_v10 = vand.u32 2147483647, %v327_v7  ;;  %v76_v37 = vmax.f32 %v318_v0, 0.0  ;;  %v77_v43 = vmax.f32 %v320_v1, 0.0 }
  0x1f   :  { %v84_v6 = vsub.f32 0.0, %v80_v2  ;;  %v85_v8 = vsub.f32 0.0, %v81_v4  ;;  %v78_v47 = vmax.f32 %v323_v3, 0.0  ;;  %v79_v54 = vmax.f32 %v327_v7, 0.0  ;;  %s181_s1 = sshll.u32 %s290_s0, 4  ;;  %s182_s1 = int_to_ptr.vmem [resolvable:$true] %s181_s1 }
  0x20   :  { %v86_v9 = vsub.f32 0.0, %v82_v5  ;;  %v87_v14 = vsub.f32 0.0, %v83_v10  ;;  %s260_s21 = scalar_lea.vmem %s182_s1, 512  ;;  %p265_p11 = scmp.lt.s32.totalorder %s182_s1, %s182_s1 }
  0x21   :  { %v88_v11 = vmul.f32 1.442695, %v84_v6  ;;  %v90_v12 = vmul.f32 1.442695, %v85_v8  ;;  %v72_v8 = vld [vmem:[#allocation5] sm:$0xff]  ;;  %p261_p10 = scmp.ne.s32.totalorder %s182_s1, %s260_s21  ;;  %p266_p12 = scmp.lt.s32.totalorder %s260_s21, %s260_s21 }
  0x22   :  { %v92_v13 = vmul.f32 1.442695, %v86_v9  ;;  %v94_v15 = vmul.f32 1.442695, %v87_v14 }
  0x23   :  { %204 = vpow2.f32 %v88_v11  ;;  %v73_v11 = vld [vmem:[#allocation5 + $0x8] sm:$0xff]  ;;  %p267_p13 = por %p266_p12, %p265_p11 }
  0x24   :  { %206 = vpow2.f32 %v90_v12 }
  0x25   :  { %208 = vpow2.f32 %v92_v13  ;;  %p268_p0 = pnand %p267_p13, %p261_p10 }
  0x26   :  { %210 = vpow2.f32 %v94_v15  ;;  %v74_v15 = vld [vmem:[#allocation5 + $0x10] sm:$0xff] }
  0x30   :  { %v205_v16 = vpop.eup %204 }
  0x31   :  { %v207_v17 = vpop.eup %206  ;;  %v96_v18 = vadd.f32 1.0, %v205_v16  ;;  %v99_v24 = vmul.f32 -0.5, %v205_v16  ;;  %v102_v29 = vand.u32 2147483647, %v205_v16 }
  0x32   :  { %v209_v19 = vpop.eup %208  ;;  %v105_v20 = vadd.f32 1.0, %v207_v17  ;;  %v108_v25 = vmul.f32 -0.5, %v207_v17  ;;  %v111_v31 = vand.u32 2147483647, %v207_v17 }
  0x33   :  { %v211_v21 = vpop.eup %210  ;;  %212 = vlog2.f32 %v96_v18  ;;  %v114_v22 = vadd.f32 1.0, %v209_v19  ;;  %v117_v26 = vmul.f32 -0.5, %v209_v19  ;;  %v100_v27 = vadd.f32 1.0, %v99_v24 }
  0x34   :  { %214 = vlog2.f32 %v105_v20  ;;  %v123_v23 = vadd.f32 1.0, %v211_v21  ;;  %v126_v28 = vmul.f32 -0.5, %v211_v21  ;;  %v109_v30 = vadd.f32 1.0, %v108_v25 }
  0x35   :  { %216 = vlog2.f32 %v114_v22  ;;  %v118_v32 = vadd.f32 1.0, %v117_v26  ;;  %v120_v33 = vand.u32 2147483647, %v209_v19  ;;  %v101_v34 = vmul.f32 %v205_v16, %v100_v27 }
  0x36   :  { %218 = vlog2.f32 %v123_v23  ;;  %v127_v35 = vadd.f32 1.0, %v126_v28  ;;  %vm331_vm0 = vcmp.lt.f32.partialorder %v102_v29, 0.0004427343  ;;  %v110_v39 = vmul.f32 %v207_v17, %v109_v30 }
  0x37   :  { %v129_v40 = vand.u32 2147483647, %v211_v21  ;;  %vm112_vm1 = vcmp.lt.f32.partialorder %v111_v31, 0.0004427343  ;;  %v119_v44 = vmul.f32 %v209_v19, %v118_v32  ;;  %vm121_vm2 = vcmp.lt.f32.partialorder %v120_v33, 0.0004427343 }
  0x38   :  { %v128_v50 = vmul.f32 %v211_v21, %v127_v35  ;;  %v75_v19 = vld [vmem:[#allocation5 + $0x18] sm:$0xff] }
  0x39   :  { %vm130_vm3 = vcmp.lt.f32.partialorder %v129_v40, 0.0004427343 }
  0x40   :  { %v213_v36 = vpop.eup %212 }
  0x41   :  { %v215_v41 = vpop.eup %214  ;;  %v98_v42 = vmul.f32 0.6931472, %v213_v36 }
  0x42   :  { %v217_v45 = vpop.eup %216  ;;  %v107_v46 = vmul.f32 0.6931472, %v215_v41 }
  0x43   :  { %v104_v48 = vsel %vm331_vm0, %v101_v34, %v98_v42  ;;  %v116_v49 = vmul.f32 0.6931472, %v217_v45  ;;  %v219_v51 = vpop.eup %218 }
  0x44   :  { %v132_v52 = vadd.f32 %v104_v48, %v76_v37  ;;  %v113_v53 = vsel %vm112_vm1, %v110_v39, %v107_v46  ;;  %v125_v57 = vmul.f32 0.6931472, %v219_v51 }
  0x45   :  { %v133_v55 = vadd.f32 %v113_v53, %v77_v43  ;;  %v122_v56 = vsel %vm121_vm2, %v119_v44, %v116_v49 }
  0x46   :  { %v136_v58 = vsub.f32 %v132_v52, %v318_v0  ;;  %v144_v59 = vmin.f32 %v132_v52, 100.0  ;;  %v134_v60 = vadd.f32 %v122_v56, %v78_v47  ;;  %v131_v63 = vsel %vm130_vm3, %v128_v50, %v125_v57 }
  0x47   :  { %v137_v61 = vsub.f32 %v133_v55, %v320_v1  ;;  %v145_v62 = vmin.f32 %v133_v55, 100.0  ;;  %v135_v6 = vadd.f32 %v131_v63, %v79_v54 }
  0x48   :  { %v140_v2 = vmin.f32 %v136_v58, 100.0  ;;  %v138_v4 = vsub.f32 %v134_v60, %v323_v3  ;;  %v146_v5 = vmin.f32 %v134_v60, 100.0 }
  0x49   :  { %v141_v9 = vmin.f32 %v137_v61, 100.0  ;;  %v139_v13 = vsub.f32 %v135_v6, %v327_v7  ;;  %v147_v14 = vmin.f32 %v135_v6, 100.0 }
  0x4a   :  { %v148_v10 = vsub.f32 %v140_v2, %v144_v59  ;;  %v142_v12 = vmin.f32 %v138_v4, 100.0 }
  0x4b   :  { %v149_v0 = vsub.f32 %v141_v9, %v145_v62  ;;  %v143_v1 = vmin.f32 %v139_v13, 100.0 }
  0x4c   :  { %v152_v16 = vmul.f32 %v148_v10, %v72_v8  ;;  %v150_v17 = vsub.f32 %v142_v12, %v146_v5 }
  0x4d   :  { %v153_v18 = vmul.f32 %v149_v0, %v73_v11  ;;  %v151_v3 = vsub.f32 %v143_v1, %v147_v14 }
  0x4e   :  { %v156_v20 = vadd.f32 %v152_v16, %v144_v59  ;;  %v154_v21 = vmul.f32 %v150_v17, %v74_v15 }
  0x4f   :  { %v157_v22 = vadd.f32 %v153_v18, %v145_v62  ;;  %v155_v24 = vmul.f32 %v151_v3, %v75_v19 }
  0x50   :  { %v158_v23 = vadd.f32 %v154_v21, %v146_v5  ;;  %172 = vst [vmem:[#allocation7] sm:$0xff] %v156_v20 }
  0x51   :  { %v159_v25 = vadd.f32 %v155_v24, %v147_v14  ;;  %173 = vst [vmem:[#allocation7 + $0x8] sm:$0xff] %v157_v22 }
  0x52   :  { %174 = vst [vmem:[#allocation7 + $0x10] sm:$0xff] %v158_v23 }
  0x53   :  { %175 = vst [vmem:[#allocation7 + $0x18] sm:$0xff] %v159_v25 }
  0x54   :  { %271 = shalt.err (!%p268_p0)
}
  0x55   :  { %187 = dma.vmem_to_hbm [thread:$0]  %s182_s1, 512, %s352_s2, [#allocation4], %s287_s12, %s287_s12, %s288_s13  }
  0x56   :  { %284 = dma.done.wait [#allocation4], 512  }
  0x57   :  { %285 = vsyncadd [#allocation4], 4294966784 }
  0x58   :  { %191 = vsyncpa [#allocation3], 1 }
  0x59   :  { %192 = vsyncpa [#allocation6], 1 }
  0x5a   :  { %193 = vsyncpa [#allocation4], 1 }

</bundles_post_ra>
